<compile_context>
chip_gen: v7x
topology: tpu7x:2x2x1
jax: 0.10.0
libtpu: 0.0.40
codegen_flags: <defaults>
</compile_context>

<pallas_src>
import functools

import jax
import jax.numpy as jnp
from jax import lax
from jax.experimental import pallas as pl
from jax.experimental.pallas import tpu as pltpu

OBS_DIM = 3                    # Pendulum-v1 observation dim
ACT_DIM = 1                    # Pendulum-v1 action dim
IN_DIM = OBS_DIM + ACT_DIM     # 4
HIDDEN = 256


def _round_up(n, m):
    return ((n + m - 1) // m) * m


def qnet_kernel(xa_ref, w2_ref, pack_ref, b3_ref, o_ref):
    """One batch tile.

    xa_ref:   [tb, IN_DIM]   fused (obs, act) rows
    w2_ref:   [H, H]         fc2 weight, [in, out] layout (VMEM resident)
    pack_ref: [8, H]         rows 0..3 = fc1 weight ([in, out]), 4 = b1,
                             5 = b2, 6 = fc3 weight, 7 = zeros
    b3_ref:   (1,) f32       fc3 bias (SMEM scalar)
    o_ref:    [1, tb]        q values, batch on the lane axis (lane-dense)
    """
    p = pack_ref[...].astype(jnp.float32)             # [8, H] small params

    # fc1 + relu: IN_DIM broadcast FMAs on the VPU (no MXU traffic).
    h1 = p[4:5, :]                                    # b1, [1, H]
    for k in range(IN_DIM):                           # static unroll
        xk = xa_ref[:, k:k + 1].astype(jnp.float32)   # [tb, 1]
        h1 = h1 + xk * p[k:k + 1, :]                  # [tb,1]*[1,H] -> [tb,H]
    h1 = jnp.maximum(h1, 0.0)

    # fc2 + relu: the only real MXU matmul (f32 accumulation).
    h2 = jnp.dot(h1.astype(w2_ref.dtype), w2_ref[...],
                 preferred_element_type=jnp.float32)  # [tb, H]
    h2 = jnp.maximum(h2 + p[5:6, :], 0.0)

    # fc3: contract the lane (hidden) dims of w3 and h2 (NT matmul, a single
    # LHS row pushed) -> lane-dense [1, tb] row, so the HBM writeback is
    # unmasked full-lane stores instead of a strided [tb, 1] column.
    q = lax.dot_general(p[6:7, :], h2,
                        dimension_numbers=(((1,), (1,)), ((), ())),
                        preferred_element_type=jnp.float32)    # [1, tb]
    o_ref[...] = (q + b3_ref[0]).astype(o_ref.dtype)


@functools.partial(jax.jit, static_argnames=("block_b",))
def qnetwork_forward(x, a, params, block_b=1024):
    """x: [B, OBS_DIM], a: [B, ACT_DIM]  ->  q: [B, 1] (float32)."""
    pack, w2, b3 = params
    B = x.shape[0]

    # Batch tiling (batch ends up on the lane axis of the output):
    #   * tb is a multiple of 128 -> unmasked lane-dense output stores
    #   * >= 2 grid steps whenever B spans more than one lane tile so both
    #     v7x TensorCores get work; capped at block_b rows per step.
    if B <= 128:
        n_tiles = 1
    else:
        n_tiles = max(2, -(-B // block_b))
    tb = _round_up(-(-B // n_tiles), 128)
    bp = tb * n_tiles

    # Fuse obs + act into one [B, IN_DIM] input (free XLA concat) and zero-pad
    # the ragged batch (padded rows compute garbage and are sliced off below).
    xa = jnp.concatenate([x, a], axis=1).astype(jnp.float32)
    xa = jnp.pad(xa, ((0, bp - B), (0, 0)))

    vmem = pltpu.MemorySpace.VMEM
    smem = pltpu.MemorySpace.SMEM
    resident = lambda arr: pl.BlockSpec(arr.shape, lambda i: (0, 0),
                                        memory_space=vmem)

    wbytes = pack.size * pack.dtype.itemsize + w2.size * w2.dtype.itemsize
    cost = pl.CostEstimate(
        flops=2 * bp * (IN_DIM * HIDDEN + HIDDEN * HIDDEN + HIDDEN),
        transcendentals=0,
        bytes_accessed=wbytes + (xa.size + bp) * 4,
    )

    q_row = pl.pallas_call(
        qnet_kernel,
        out_shape=jax.ShapeDtypeStruct((1, bp), jnp.float32),
        grid=(bp // tb,),
        in_specs=[
            pl.BlockSpec((tb, IN_DIM), lambda i: (i, 0), memory_space=vmem),
            resident(w2),                      # fc2 weight stays VMEM-resident
            resident(pack),                    # fc1 w + b1 + b2 + w3, one DMA
            pl.BlockSpec(memory_space=smem),   # fc3 bias scalar
        ],
        out_specs=pl.BlockSpec((1, tb), lambda i: (0, i), memory_space=vmem),
        compiler_params=pltpu.CompilerParams(
            dimension_semantics=("parallel",)),
        cost_estimate=cost,
    )(xa, w2, pack, b3)

    q = q_row.reshape(bp, 1)
    return q[:B] if bp != B else q


def init_params(key, dtype=jnp.float32):
    """PyTorch-style uniform(-1/sqrt(fan_in), 1/sqrt(fan_in)) init.

    Returns (pack, w2, b3):
      pack : [8, HIDDEN]  rows 0..IN_DIM-1 = fc1 weight ([in, out] layout),
                          row 4 = fc1 bias, row 5 = fc2 bias,
                          row 6 = fc3 weight, row 7 = zeros.
      w2   : [HIDDEN, HIDDEN]  fc2 weight in [in, out] layout.
      b3   : (1,) float32      fc3 bias (SMEM scalar inside the kernel).
    Pass dtype=jnp.bfloat16 on v6e/v7x to halve resident-weight HBM traffic
    (MXU accumulation and all elementwise math stay f32 inside the kernel).
    """
    def uniform(k, shape, fan_in):
        bound = fan_in ** -0.5
        return jax.random.uniform(k, shape, jnp.float32, -bound, bound)

    k1w, k1b, k2w, k2b, k3w, k3b = jax.random.split(key, 6)
    w1 = uniform(k1w, (IN_DIM, HIDDEN), IN_DIM)
    b1 = uniform(k1b, (HIDDEN,), IN_DIM)
    w2 = uniform(k2w, (HIDDEN, HIDDEN), HIDDEN)
    b2 = uniform(k2b, (HIDDEN,), HIDDEN)
    w3 = uniform(k3w, (HIDDEN,), HIDDEN)
    b3 = uniform(k3b, (1,), HIDDEN)

    pack = jnp.zeros((8, HIDDEN), jnp.float32)
    pack = pack.at[:IN_DIM, :].set(w1)
    pack = pack.at[4, :].set(b1)
    pack = pack.at[5, :].set(b2)
    pack = pack.at[6, :].set(w3)
    return pack.astype(dtype), w2.astype(dtype), b3   # b3 stays f32


def _reference(x, a, params):
    pack, w2, b3 = params
    pack = pack.astype(jnp.float32)
    w2 = w2.astype(jnp.float32)
    w1, b1, b2, w3 = pack[:IN_DIM], pack[4], pack[5], pack[6]
    hi = lax.Precision.HIGHEST
    xa = jnp.concatenate([x, a], axis=1)
    h = jnp.maximum(jnp.dot(xa, w1, precision=hi) + b1, 0.0)
    h = jnp.maximum(jnp.dot(h, w2, precision=hi) + b2, 0.0)
    return jnp.dot(h, w3[:, None], precision=hi) + b3


if __name__ == "__main__":
    key = jax.random.PRNGKey(0)
    kp, kx, ka = jax.random.split(key, 3)

    params = init_params(kp)   # f32 demo; pass dtype=jnp.bfloat16 on v6e/v7x

    # Small batch (single 128-lane tile).
    B = 8
    x = jax.random.normal(kx, (B, OBS_DIM), jnp.float32)   # observations
    a = jax.random.normal(ka, (B, ACT_DIM), jnp.float32)   # actions
    q = qnetwork_forward(x, a, params)
    jax.block_until_ready(q)
    ref = _reference(x, a, params)
    assert q.shape == (B, 1)
    assert jnp.allclose(q, ref, atol=1e-5, rtol=1e-5)

    # Ragged batch that spans two tiles: exercises zero-pad + slice and the
    # 2-step batch grid that feeds both TensorCores on v7x.
    B2 = 200
    x2 = jax.random.normal(kx, (B2, OBS_DIM), jnp.float32)
    a2 = jax.random.normal(ka, (B2, ACT_DIM), jnp.float32)
    q2 = qnetwork_forward(x2, a2, params)
    jax.block_until_ready(q2)
    ref2 = _reference(x2, a2, params)
    assert q2.shape == (B2, 1)
    assert jnp.allclose(q2, ref2, atol=1e-5, rtol=1e-5)

    print("KERNEL_OK")
</pallas_src>

<mosaic_0001>
module attributes {stable_mosaic.version = 11 : i64} {
  func.func @qnet_kernel(%arg0: i32, %arg1: memref<128x4xf32, #tpu.memory_space<vmem>>, %arg2: memref<256x256xf32, #tpu.memory_space<vmem>>, %arg3: memref<8x256xf32, #tpu.memory_space<vmem>>, %arg4: memref<1xf32, #tpu.memory_space<smem>>, %arg5: memref<1x128xf32, #tpu.memory_space<vmem>>) attributes {dimension_semantics = [#tpu.dimension_semantics<parallel>], iteration_bounds = array<i64: 1>, scalar_prefetch = 0 : i64, scratch_operands = 0 : i64, tpu.core_type = #tpu.core_type<tc>, window_params = [{transform_indices = @transform_0, window_bounds = array<i64: 128, 4>}, {pipeline_mode = #tpu.pipeline_mode<synchronous>, transform_indices = @transform_1, window_bounds = array<i64: 256, 256>}, {pipeline_mode = #tpu.pipeline_mode<synchronous>, transform_indices = @transform_2, window_bounds = array<i64: 8, 256>}, {transform_indices = @transform_3, window_bounds = array<i64: 1>}, {transform_indices = @transform_4, window_bounds = array<i64: 1, 128>}]} {
    %c0 = arith.constant 0 : index
    %c0_0 = arith.constant 0 : index
    %0 = vector.load %arg3[%c0, %c0_0] : memref<8x256xf32, #tpu.memory_space<vmem>>, vector<8x256xf32>
    %1 = vector.extract_strided_slice %0 {offsets = [4, 0], sizes = [1, 256], strides = [1, 1]} : vector<8x256xf32> to vector<1x256xf32>
    %c0_1 = arith.constant 0 : index
    %c0_2 = arith.constant 0 : index
    %2 = vector.load %arg1[%c0_1, %c0_2] : memref<128x4xf32, #tpu.memory_space<vmem>>, vector<128x1xf32>
    %3 = vector.extract_strided_slice %0 {offsets = [0, 0], sizes = [1, 256], strides = [1, 1]} : vector<8x256xf32> to vector<1x256xf32>
    %4 = vector.broadcast %2 : vector<128x1xf32> to vector<128x256xf32>
    %5 = vector.broadcast %3 : vector<1x256xf32> to vector<128x256xf32>
    %6 = arith.mulf %4, %5 : vector<128x256xf32>
    %7 = vector.broadcast %1 : vector<1x256xf32> to vector<128x256xf32>
    %8 = arith.addf %7, %6 : vector<128x256xf32>
    %c0_3 = arith.constant 0 : index
    %c1 = arith.constant 1 : index
    %9 = vector.load %arg1[%c0_3, %c1] : memref<128x4xf32, #tpu.memory_space<vmem>>, vector<128x1xf32>
    %10 = vector.extract_strided_slice %0 {offsets = [1, 0], sizes = [1, 256], strides = [1, 1]} : vector<8x256xf32> to vector<1x256xf32>
    %11 = vector.broadcast %9 : vector<128x1xf32> to vector<128x256xf32>
    %12 = vector.broadcast %10 : vector<1x256xf32> to vector<128x256xf32>
    %13 = arith.mulf %11, %12 : vector<128x256xf32>
    %14 = arith.addf %8, %13 : vector<128x256xf32>
    %c0_4 = arith.constant 0 : index
    %c2 = arith.constant 2 : index
    %15 = vector.load %arg1[%c0_4, %c2] : memref<128x4xf32, #tpu.memory_space<vmem>>, vector<128x1xf32>
    %16 = vector.extract_strided_slice %0 {offsets = [2, 0], sizes = [1, 256], strides = [1, 1]} : vector<8x256xf32> to vector<1x256xf32>
    %17 = vector.broadcast %15 : vector<128x1xf32> to vector<128x256xf32>
    %18 = vector.broadcast %16 : vector<1x256xf32> to vector<128x256xf32>
    %19 = arith.mulf %17, %18 : vector<128x256xf32>
    %20 = arith.addf %14, %19 : vector<128x256xf32>
    %c0_5 = arith.constant 0 : index
    %c3 = arith.constant 3 : index
    %21 = vector.load %arg1[%c0_5, %c3] : memref<128x4xf32, #tpu.memory_space<vmem>>, vector<128x1xf32>
    %22 = vector.extract_strided_slice %0 {offsets = [3, 0], sizes = [1, 256], strides = [1, 1]} : vector<8x256xf32> to vector<1x256xf32>
    %23 = vector.broadcast %21 : vector<128x1xf32> to vector<128x256xf32>
    %24 = vector.broadcast %22 : vector<1x256xf32> to vector<128x256xf32>
    %25 = arith.mulf %23, %24 : vector<128x256xf32>
    %26 = arith.addf %20, %25 : vector<128x256xf32>
    %cst = arith.constant 0.000000e+00 : f32
    %27 = vector.broadcast %cst : f32 to vector<128x256xf32>
    %28 = arith.maximumf %26, %27 : vector<128x256xf32>
    %c0_6 = arith.constant 0 : index
    %c0_7 = arith.constant 0 : index
    %29 = vector.load %arg2[%c0_6, %c0_7] : memref<256x256xf32, #tpu.memory_space<vmem>>, vector<256x256xf32>
    %cst_8 = arith.constant dense<0.000000e+00> : vector<128x256xf32>
    %30 = tpu.matmul %28, %29, %cst_8 {dimension_numbers = #tpu.dot_dimension_numbers<[1], [0], [0], [1], [0, 0, 1, 1], [], []>} : vector<128x256xf32>, vector<256x256xf32>, vector<128x256xf32> -> vector<128x256xf32>
    %31 = vector.extract_strided_slice %0 {offsets = [5, 0], sizes = [1, 256], strides = [1, 1]} : vector<8x256xf32> to vector<1x256xf32>
    %32 = vector.broadcast %31 : vector<1x256xf32> to vector<128x256xf32>
    %33 = arith.addf %30, %32 : vector<128x256xf32>
    %cst_9 = arith.constant 0.000000e+00 : f32
    %34 = vector.broadcast %cst_9 : f32 to vector<128x256xf32>
    %35 = arith.maximumf %33, %34 : vector<128x256xf32>
    %36 = vector.extract_strided_slice %0 {offsets = [6, 0], sizes = [1, 256], strides = [1, 1]} : vector<8x256xf32> to vector<1x256xf32>
    %cst_10 = arith.constant dense<0.000000e+00> : vector<1x128xf32>
    %37 = tpu.matmul %36, %35, %cst_10 {dimension_numbers = #tpu.dot_dimension_numbers<[1], [1], [0], [0], [0, 0, 1, 0], [], []>} : vector<1x256xf32>, vector<128x256xf32>, vector<1x128xf32> -> vector<1x128xf32>
    %c0_11 = arith.constant 0 : index
    %38 = memref.load %arg4[%c0_11] : memref<1xf32, #tpu.memory_space<smem>>
    %39 = vector.broadcast %38 : f32 to vector<1x128xf32>
    %40 = arith.addf %37, %39 : vector<1x128xf32>
    %c0_12 = arith.constant 0 : index
    %c0_13 = arith.constant 0 : index
    %41 = vector.load %arg5[%c0_12, %c0_13] : memref<1x128xf32, #tpu.memory_space<vmem>>, vector<1x128xf32>
    tpu.vector_store %arg5[%c0_12, %c0_13], %40 {strides = array<i32>} : memref<1x128xf32, #tpu.memory_space<vmem>>, vector<1x128xf32>,
    return
  }
  func.func @transform_0(%arg0: i32) -> (i32, i32) {
    %c0_i32 = arith.constant 0 : i32
    %c0_i32_0 = arith.constant 0 : i32
    return %arg0, %c0_i32 : i32, i32
  }
  func.func @transform_1(%arg0: i32) -> (i32, i32) {
    %c0_i32 = arith.constant 0 : i32
    %c0_i32_0 = arith.constant 0 : i32
    %c0_i32_1 = arith.constant 0 : i32
    return %c0_i32, %c0_i32_0 : i32, i32
  }
  func.func @transform_2(%arg0: i32) -> (i32, i32) {
    %c0_i32 = arith.constant 0 : i32
    %c0_i32_0 = arith.constant 0 : i32
    %c0_i32_1 = arith.constant 0 : i32
    return %c0_i32, %c0_i32_0 : i32, i32
  }
  func.func @transform_3(%arg0: i32) -> i32 {
    %c0_i32 = arith.constant 0 : i32
    %c0_i32_0 = arith.constant 0 : i32
    return %c0_i32 : i32
  }
  func.func @transform_4(%arg0: i32) -> (i32, i32) {
    %c0_i32 = arith.constant 0 : i32
    %c0_i32_0 = arith.constant 0 : i32
    return %c0_i32, %arg0 : i32, i32
  }
}

</mosaic_0001>

<bundles_post_ra>
// kernel: qnetwork_forward.1
= control target key start
LH: loop header
LB: loop body
LE: loop exit
PB: predicated region body
PF: predicated region fallthrough
CT: control target
= control target key end

     0   :  { %10 = vsyncpa [#allocation4], 0  ;;  %s1177_s15 = smov [#allocation3]   ;;  %s1699_s0 = inlined_call_operand.vmem [shape: f32[128,4], index: 0, kind: input, shape index: {}]   ;;  %s1700_s1 = inlined_call_operand.hbm [shape: f32[256,256], index: 1, kind: input, shape index: {}]   ;;  %s1701_s2 = inlined_call_operand.vmem [shape: f32[8,256], index: 2, kind: input, shape index: {}]   ;;  %s1702_s3 = inlined_call_operand.<no memory space> [shape: f32[1], index: 3, kind: input, shape index: {}]   ;;  %s1703_s4 = inlined_call_operand.vmem [shape: f32[1,128], index: 4, kind: output, shape index: {}]  }
   0x1   :  { %s18_s16 = sshll.u32 %s1177_s15, 4  ;;  %s1153_s19 = scalar_lea.hbm %s1700_s1, 8192  ;;  %s19_s16 = int_to_ptr.vmem [resolvable:$true] %s18_s16 }
   0x2   :  { %p1154_p0 = scmp.ne.s32.totalorder %s1700_s1, %s1153_s19  ;;  %p1157_p1 = scmp.lt.u32.totalorder %s1153_s19, %s1700_s1 }
   0x4   :  { %p1159_p2 = pnand %p1157_p1, %p1154_p0 }
   0x6   :  { %1162 = shalt.err (!%p1159_p2)
}
   0x7   :  { %s1163_s24 = scalar_lea.vmem %s19_s16, 8192  ;;  %p1168_p4 = scmp.lt.s32.totalorder %s19_s16, %s19_s16 }
   0x8   :  { %p1164_p3 = scmp.ne.s32.totalorder %s19_s16, %s1163_s24  ;;  %p1169_p5 = scmp.lt.s32.totalorder %s1163_s24, %s1163_s24 }
   0xa   :  { %p1170_p6 = por %p1169_p5, %p1168_p4 }
   0xc   :  { %p1171_p7 = pnand %p1170_p6, %p1164_p3 }
   0xe   :  { %1174 = shalt.err (!%p1171_p7)
}
   0xf   :  { %s1178_s25 = smov 256   ;;  %s1179_s26 = smov 16  }
  0x10   :  { %24 = dma.hbm_to_vmem [thread:$0]  %s1700_s1, 8192, %s19_s16, [#allocation4], %s1178_s25, %s1178_s25, %s1179_s26  }
  0x11   :  { %1175 = dma.done.wait [#allocation4], 8192  }
  0x12   :  { %1176 = vsyncadd [#allocation4], 4294959104  ;;  %v1180_v0 = vmov 0   ;;  %v1226_v1 = vld [vmem:[%s1699_s0 + $0x8] sm:$0xff]  ;;  %v1231_v2 = vld [vmem:[%s1699_s0] sm:$0xff]  ;;  %v1181_v10 = vmov 2  }
  0x13   :  { %1103 = vset.pattern.permute.xlu1 %v1180_v0  ;;  %1102 = vset.pattern.permute.xlu0 %v1180_v0  ;;  %v1238_v3 = vld [vmem:[%s1699_s0 + $0x20] sm:$0xff]  ;;  %v651_v4 = vld [vmem:[#allocation3 + $0x8] sm:$0xff]  ;;  %v653_v5 = vld [vmem:[#allocation3 + $0x18] sm:$0xff]  ;;  %v1182_v22 = vmov 3   ;;  %v1183_v25 = vmov 1  }
  0x14   :  { %57 = vperm.xlu1 %1103, %v1226_v1   ;;  %52 = vperm.xlu0 %1102, %v1231_v2   ;;  %v999_v6 = vpack.c.bf16 %v653_v5, %v651_v4  ;;  %v650_v7 = vld [vmem:[#allocation3] sm:$0xff]  ;;  %v652_v8 = vld [vmem:[#allocation3 + $0x10] sm:$0xff]  ;;  %v655_v9 = vld [vmem:[#allocation3 + $0x28] sm:$0xff] }
  0x15   :  { %v1001_v11 = vpack.c.bf16 %v652_v8, %v650_v7  ;;  %v657_v12 = vld [vmem:[#allocation3 + $0x38] sm:$0xff]  ;;  %v654_v13 = vld [vmem:[#allocation3 + $0x20] sm:$0xff]  ;;  %v656_v14 = vld [vmem:[#allocation3 + $0x30] sm:$0xff] }
  0x16   :  { %1000 = vmatprep.subr.bf16.mxu0 %v999_v6  ;;  %v1003_v15 = vpack.c.bf16 %v657_v12, %v655_v9  ;;  %v659_v16 = vld [vmem:[#allocation3 + $0x48] sm:$0xff]  ;;  %v661_v17 = vld [vmem:[#allocation3 + $0x58] sm:$0xff]  ;;  %v1005_v18 = vpack.c.bf16 %v656_v14, %v654_v13  ;;  %v658_v20 = vld [vmem:[#allocation3 + $0x40] sm:$0xff] }
  0x17   :  { %1002 = vmatpush1.bf16.msra.mxu0 %v1001_v11  ;;  %v1007_v19 = vpack.c.bf16 %v661_v17, %v659_v16  ;;  %v660_v21 = vld [vmem:[#allocation3 + $0x50] sm:$0xff]  ;;  %v663_v23 = vld [vmem:[#allocation3 + $0x68] sm:$0xff]  ;;  %v665_v24 = vld [vmem:[#allocation3 + $0x78] sm:$0xff] }
  0x18   :  { %1104 = vset.pattern.permute.xlu1 %v1181_v10  ;;  %72 = vperm.xlu0 %1102, %v1238_v3   ;;  %v1250_v26 = vld [vmem:[%s1699_s0 + $0x18] sm:$0xff]  ;;  %v1009_v27 = vpack.c.bf16 %v660_v21, %v658_v20  ;;  %v1011_v28 = vpack.c.bf16 %v665_v24, %v663_v23  ;;  %v662_v29 = vld [vmem:[#allocation3 + $0x60] sm:$0xff]  ;;  %v664_v30 = vld [vmem:[#allocation3 + $0x70] sm:$0xff] }
  0x19   :  { %347 = vperm.xlu1 %1104, %v1231_v2   ;;  %1004 = vmatprep.subr.bf16.mxu0 %v1003_v15  ;;  %v1255_v31 = vld [vmem:[%s1699_s0 + $0x10] sm:$0xff]  ;;  %v667_v32 = vld [vmem:[#allocation3 + $0x88] sm:$0xff]  ;;  %v669_v33 = vld [vmem:[#allocation3 + $0x98] sm:$0xff]  ;;  %v1013_v35 = vpack.c.bf16 %v664_v30, %v662_v29 }
  0x1a   :  { %v1262_v34 = vld [vmem:[%s1699_s0 + $0x30] sm:$0xff]  ;;  %v1015_v36 = vpack.c.bf16 %v669_v33, %v667_v32  ;;  %v666_v37 = vld [vmem:[#allocation3 + $0x80] sm:$0xff]  ;;  %v671_v39 = vld [vmem:[#allocation3 + $0xa8] sm:$0xff] }
  0x1b   :  { %1006 = vmatpush1.bf16.msra.mxu0 %v1005_v18  ;;  %v668_v38 = vld [vmem:[#allocation3 + $0x90] sm:$0xff]  ;;  %v673_v40 = vld [vmem:[#allocation3 + $0xb8] sm:$0xff]  ;;  %v670_v43 = vld [vmem:[#allocation3 + $0xa0] sm:$0xff] }
  0x1c   :  { %1112 = vset.pattern.permute.xlu0 %v1182_v22  ;;  %1008 = vmatprep.subr.bf16.mxu0 %v1007_v19  ;;  %v1017_v41 = vpack.c.bf16 %v668_v38, %v666_v37  ;;  %v1019_v42 = vpack.c.bf16 %v673_v40, %v671_v39  ;;  %v672_v44 = vld [vmem:[#allocation3 + $0xb0] sm:$0xff]  ;;  %v675_v45 = vld [vmem:[#allocation3 + $0xc8] sm:$0xff]  ;;  %v677_v46 = vld [vmem:[#allocation3 + $0xd8] sm:$0xff] }
  0x1d   :  { %1105 = vset.pattern.permute.xlu1 %v1183_v25  ;;  %483 = vperm.xlu0 %1112, %v1231_v2   ;;  %v1021_v47 = vpack.c.bf16 %v672_v44, %v670_v43  ;;  %v1023_v48 = vpack.c.bf16 %v677_v46, %v675_v45  ;;  %v674_v49 = vld [vmem:[#allocation3 + $0xc0] sm:$0xff]  ;;  %v676_v50 = vld [vmem:[#allocation3 + $0xd0] sm:$0xff]  ;;  %v679_v51 = vld [vmem:[#allocation3 + $0xe8] sm:$0xff] }
  0x1e   :  { %215 = vperm.xlu1 %1105, %v1226_v1   ;;  %v681_v52 = vld [vmem:[#allocation3 + $0xf8] sm:$0xff]  ;;  %v1276_v53 = vld [vmem:[%s1699_s0 + $0x28] sm:$0xff]  ;;  %v1025_v54 = vpack.c.bf16 %v676_v50, %v674_v49  ;;  %v678_v56 = vld [vmem:[#allocation3 + $0xe0] sm:$0xff] }
  0x1f   :  { %1010 = vmatpush1.bf16.msra.mxu0 %v1009_v27  ;;  %v1027_v55 = vpack.c.bf16 %v681_v52, %v679_v51  ;;  %v680_v57 = vld [vmem:[#allocation3 + $0xf0] sm:$0xff]  ;;  %v683_v58 = vld [vmem:[#allocation3 + $0x108] sm:$0xff]  ;;  %v685_v59 = vld [vmem:[#allocation3 + $0x118] sm:$0xff] }
  0x20   :  { %1012 = vmatprep.subr.bf16.mxu0 %v1011_v28  ;;  %v1284_v60 = vld [vmem:[%s1699_s0 + $0x40] sm:$0xff]  ;;  %v1029_v61 = vpack.c.bf16 %v680_v57, %v678_v56  ;;  %v1031_v62 = vpack.c.bf16 %v685_v59, %v683_v58  ;;  %v689_v4 = vld [vmem:[#allocation3 + $0x138] sm:$0xff]  ;;  %v688_v9 = vld [vmem:[#allocation3 + $0x130] sm:$0xff]  ;;  %v130_v58 = vlaneseq }
  0x21   :  { %495 = vperm.xlu0 %1112, %v1250_v26   ;;  %v682_v63 = vld [vmem:[#allocation3 + $0x100] sm:$0xff]  ;;  %v1292_v5 = vld [vmem:[%s1699_s0 + $0x58] sm:$0xff]  ;;  %v691_v11 = vld [vmem:[#allocation3 + $0x148] sm:$0xff] }
  0x22   :  { %1106 = vset.pattern.permute.xlu1 %v1180_v0  ;;  %v686_v8 = vld [vmem:[#allocation3 + $0x120] sm:$0xff]  ;;  %v693_v12 = vld [vmem:[#allocation3 + $0x158] sm:$0xff]  ;;  %v692_v16 = vld [vmem:[#allocation3 + $0x150] sm:$0xff] }
  0x23   :  { %62 = vperm.xlu1 %1106, %v1255_v31   ;;  %1014 = vmatpush1.bf16.msra.mxu0 %v1013_v35  ;;  %v1037_v13 = vpack.c.bf16 %v688_v9, %v686_v8  ;;  %v1039_v14 = vpack.c.bf16 %v693_v12, %v691_v11  ;;  %v690_v15 = vld [vmem:[#allocation3 + $0x140] sm:$0xff]  ;;  %v695_v17 = vld [vmem:[#allocation3 + $0x168] sm:$0xff]  ;;  %v697_v18 = vld [vmem:[#allocation3 + $0x178] sm:$0xff] }
  0x24   :  { %1016 = vmatprep.subr.bf16.mxu0 %v1015_v36  ;;  %v1041_v19 = vpack.c.bf16 %v692_v16, %v690_v15  ;;  %v1043_v20 = vpack.c.bf16 %v697_v18, %v695_v17  ;;  %v694_v21 = vld [vmem:[#allocation3 + $0x160] sm:$0xff]  ;;  %v696_v23 = vld [vmem:[#allocation3 + $0x170] sm:$0xff]  ;;  %v699_v24 = vld [vmem:[#allocation3 + $0x188] sm:$0xff] }
  0x25   :  { %507 = vperm.xlu0 %1112, %v1262_v34   ;;  %v701_v27 = vld [vmem:[#allocation3 + $0x198] sm:$0xff]  ;;  %v1045_v28 = vpack.c.bf16 %v696_v23, %v694_v21  ;;  %v698_v30 = vld [vmem:[#allocation3 + $0x180] sm:$0xff]  ;;  %v703_v32 = vld [vmem:[#allocation3 + $0x1a8] sm:$0xff] }
  0x26   :  { %v1047_v29 = vpack.c.bf16 %v701_v27, %v699_v24  ;;  %v705_v33 = vld [vmem:[#allocation3 + $0x1b8] sm:$0xff]  ;;  %v702_v36 = vld [vmem:[#allocation3 + $0x1a0] sm:$0xff]  ;;  %v704_v37 = vld [vmem:[#allocation3 + $0x1b0] sm:$0xff] }
  0x27   :  { %1107 = vset.pattern.permute.xlu1 %v1181_v10  ;;  %1018 = vmatpush1.bf16.msra.mxu0 %v1017_v41  ;;  %v1051_v35 = vpack.c.bf16 %v705_v33, %v703_v32  ;;  %v707_v38 = vld [vmem:[#allocation3 + $0x1c8] sm:$0xff]  ;;  %v709_v39 = vld [vmem:[#allocation3 + $0x1d8] sm:$0xff]  ;;  %v1053_v41 = vpack.c.bf16 %v704_v37, %v702_v36  ;;  %v706_v43 = vld [vmem:[#allocation3 + $0x1c0] sm:$0xff] }
  0x28   :  { %351 = vperm.xlu1 %1107, %v1226_v1   ;;  %1020 = vmatprep.subr.bf16.mxu0 %v1019_v42  ;;  %v41_v40 = vld [vmem:[%s1699_s0 + $0x38] sm:$0xff]  ;;  %v1055_v42 = vpack.c.bf16 %v709_v39, %v707_v38  ;;  %v708_v44 = vld [vmem:[#allocation3 + $0x1d0] sm:$0xff]  ;;  %v711_v45 = vld [vmem:[#allocation3 + $0x1e8] sm:$0xff] }
  0x29   :  { %1123 = vset.pattern.permute.xlu0 %v1183_v25  ;;  %v713_v46 = vld [vmem:[#allocation3 + $0x1f8] sm:$0xff]  ;;  %v710_v50 = vld [vmem:[#allocation3 + $0x1e0] sm:$0xff]  ;;  %v712_v51 = vld [vmem:[#allocation3 + $0x1f0] sm:$0xff] }
  0x2a   :  { %211 = vperm.xlu0 %1123, %v1231_v2   ;;  %v687_v2 = vld [vmem:[#allocation3 + $0x128] sm:$0xff]  ;;  %v1059_v49 = vpack.c.bf16 %v713_v46, %v711_v45  ;;  %v1346_v56 = vld [vmem:[%s1699_s0 + $0x70] sm:$0xff]  ;;  %v1359_v57 = vld [vmem:[%s1699_s0 + $0x78] sm:$0xff] }
  0x2b   :  { %1022 = vmatpush1.bf16.msra.mxu0 %v1021_v47  ;;  %v1035_v7 = vpack.c.bf16 %v689_v4, %v687_v2  ;;  %v1317_v47 = vld [vmem:[%s1699_s0 + $0x50] sm:$0xff]  ;;  %v1325_v52 = vld [vmem:[%s1699_s0 + $0x68] sm:$0xff]  ;;  %v1384_v2 = vld [vmem:[%s1701_s2] sm:$0xff] }
  0x2c   :  { %1108 = vset.pattern.permute.xlu1 %v1182_v22  ;;  %1024 = vmatprep.subr.bf16.mxu0 %v1023_v48  ;;  %v1057_v48 = vpack.c.bf16 %v708_v44, %v706_v43  ;;  %v1389_v4 = vld [vmem:[%s1701_s2 + $0x8] sm:$0xff] }
  0x2d   :  { %487 = vperm.xlu1 %1108, %v1226_v1   ;;  %v684_v1 = vld [vmem:[#allocation3 + $0x110] sm:$0xff] }
  0x2e   :  { %219 = vperm.xlu0 %1123, %v1255_v31   ;;  %v1033_v6 = vpack.c.bf16 %v684_v1, %v682_v63 }
  0x2f   :  { %1026 = vmatpush1.bf16.msra.mxu0 %v1025_v54  ;;  %v1061_v54 = vpack.c.bf16 %v712_v51, %v710_v50 }
  0x30   :  { %1028 = vmatprep.subr.bf16.mxu0 %v1027_v55  ;;  %v43_v55 = vld [vmem:[%s1699_s0 + $0x48] sm:$0xff] }
  0x31   :  { %1109 = vset.pattern.permute.xlu1 %v1180_v0 }
  0x32   :  { %67 = vperm.xlu1 %1109, %v1250_v26   ;;  %231 = vperm.xlu0 %1123, %v1276_v53  }
  0x33   :  { %1030 = vmatpush1.bf16.msra.mxu0 %v1029_v61 }
  0x34   :  { %1032 = vmatprep.subr.bf16.mxu0 %v1031_v62  ;;  %v1376_v62 = vshrl.u32 %v130_v58, 7 }
  0x36   :  { %1110 = vset.pattern.permute.xlu1 %v1183_v25  ;;  %243 = vperm.xlu0 %1123, %v1284_v60   ;;  %v132_v1 = vsub.s32 0, %v1376_v62  ;;  %v172_v8 = vsub.s32 4, %v1376_v62 }
  0x37   :  { %223 = vperm.xlu1 %1110, %v1250_v26   ;;  %1034 = vmatpush1.bf16.msra.mxu0 %v1033_v6 }
  0x38   :  { %1036 = vmatprep.subr.bf16.mxu0 %v1035_v7  ;;  %v276_v7 = vsub.s32 1, %v1376_v62  ;;  %v1398_v9 = vrot.slane %v1384_v2, %v132_v1  ;;  %v1401_v11 = vrot.slane %v1389_v4, %v132_v1  ;;  %v1421_v21 = vrot.slane %v1389_v4, %v172_v8 }
  0x3a   :  { %255 = vperm.xlu0 %1123, %v1292_v5   ;;  %v1413_v18 = vrot.slane %v1389_v4, %v276_v7 }
  0x3b   :  { %1111 = vset.pattern.permute.xlu1 %v1182_v22  ;;  %1038 = vmatpush1.bf16.msra.mxu0 %v1037_v13  ;;  %v412_v13 = vsub.s32 2, %v1376_v62 }
  0x3c   :  { %491 = vperm.xlu1 %1111, %v1255_v31   ;;  %1040 = vmatprep.subr.bf16.mxu0 %v1039_v14  ;;  %v548_v14 = vsub.s32 3, %v1376_v62 }
  0x3d   :  { %v1424_v23 = vrot.slane %v1384_v2, %v412_v13  ;;  %v1427_v24 = vrot.slane %v1389_v4, %v412_v13 }
  0x3e   :  { %1134 = vset.pattern.permute.xlu0 %v1181_v10  ;;  %v1430_v27 = vrot.slane %v1384_v2, %v548_v14  ;;  %v1438_v32 = vrot.slane %v1389_v4, %v548_v14 }
  0x3f   :  { %355 = vperm.xlu0 %1134, %v1255_v31   ;;  %1042 = vmatpush1.bf16.msra.mxu0 %v1041_v19  ;;  %v700_v31 = vld [vmem:[#allocation3 + $0x190] sm:$0xff] }
  0x40   :  { %1113 = vset.pattern.permute.xlu1 %v1181_v10  ;;  %1044 = vmatprep.subr.bf16.mxu0 %v1043_v20  ;;  %v1418_v20 = vrot.slane %v1384_v2, %v172_v8 }
  0x41   :  { %359 = vperm.xlu1 %1113, %v1250_v26   ;;  %v1049_v26 = vpack.c.bf16 %v700_v31, %v698_v30  ;;  %v1435_v31 = vrot.slane %v1384_v2, %v276_v7 }
  0x43   :  { %367 = vperm.xlu0 %1134, %v1276_v53   ;;  %1046 = vmatpush1.bf16.msra.mxu0 %v1045_v28 }
  0x44   :  { %1048 = vmatprep.subr.bf16.mxu0 %v1047_v29 }
  0x45   :  { %1114 = vset.pattern.permute.xlu1 %v1183_v25 }
  0x46   :  { %227 = vperm.xlu1 %1114, %v1238_v3  }
  0x47   :  { %379 = vperm.xlu0 %1134, %v1284_v60   ;;  %1050 = vmatpush1.bf16.msra.mxu0 %v1049_v26 }
  0x48   :  { %1052 = vmatprep.subr.bf16.mxu0 %v1051_v35 }
  0x4a   :  { %1115 = vset.pattern.permute.xlu1 %v1180_v0 }
  0x4b   :  { %77 = vperm.xlu1 %1115, %v1276_v53   ;;  %391 = vperm.xlu0 %1134, %v1292_v5  }
  0x4c   :  { %1054 = vmatpush1.bf16.msra.mxu0 %v1053_v41 }
  0x4d   :  { %1056 = vmatprep.subr.bf16.mxu0 %v1055_v42 }
  0x4f   :  { %1116 = vset.pattern.permute.xlu1 %v1181_v10  ;;  %1137 = vset.pattern.permute.xlu0 %v1180_v0 }
  0x50   :  { %363 = vperm.xlu1 %1116, %v1238_v3   ;;  %87 = vperm.xlu0 %1137, %v41_v40  }
  0x51   :  { %1058 = vmatpush1.bf16.msra.mxu0 %v1057_v48 }
  0x52   :  { %1060 = vmatprep.subr.bf16.mxu0 %v1059_v49 }
  0x54   :  { %1117 = vset.pattern.permute.xlu1 %v1182_v22  ;;  %102 = vperm.xlu0 %1137, %v1317_v47  }
  0x55   :  { %499 = vperm.xlu1 %1117, %v1238_v3   ;;  %1062 = vmatpush1.bf16.msra.mxu0 %v1061_v54  ;;  %v1339_v3 = vld [vmem:[%s1699_s0 + $0x60] sm:$0xff] }
  0x58   :  { %117 = vperm.xlu0 %1137, %v1325_v52  }
  0x59   :  { %1118 = vset.pattern.permute.xlu1 %v1180_v0 }
  0x5a   :  { %82 = vperm.xlu1 %1118, %v1262_v34  }
  0x5c   :  { %1140 = vset.pattern.permute.xlu0 %v1182_v22 }
  0x5d   :  { %519 = vperm.xlu0 %1140, %v43_v55  }
  0x5e   :  { %1119 = vset.pattern.permute.xlu1 %v1183_v25 }
  0x5f   :  { %235 = vperm.xlu1 %1119, %v1262_v34  }
  0x61   :  { %531 = vperm.xlu0 %1140, %v1339_v3  }
  0x63   :  { %1120 = vset.pattern.permute.xlu1 %v1182_v22 }
  0x64   :  { %503 = vperm.xlu1 %1120, %v1276_v53  }
  0x65   :  { %1145 = vset.pattern.permute.xlu0 %v1183_v25 }
  0x66   :  { %267 = vperm.xlu0 %1145, %v1346_v56  }
  0x68   :  { %1121 = vset.pattern.permute.xlu1 %v1181_v10 }
  0x69   :  { %371 = vperm.xlu1 %1121, %v1262_v34  }
  0x6a   :  { %1148 = vset.pattern.permute.xlu0 %v1181_v10 }
  0x6b   :  { %403 = vperm.xlu0 %1148, %v1346_v56  }
  0x6d   :  { %1122 = vset.pattern.permute.xlu1 %v1183_v25 }
  0x6e   :  { %239 = vperm.xlu1 %1122, %v41_v40  }
  0x6f   :  { %407 = vperm.xlu0 %1148, %v1359_v57  }
  0x72   :  { %1124 = vset.pattern.permute.xlu1 %v1180_v0 }
  0x73   :  { %92 = vperm.xlu1 %1124, %v1284_v60   ;;  %1151 = vset.pattern.permute.xlu0 %v1182_v22 }
  0x77   :  { %1125 = vset.pattern.permute.xlu1 %v1181_v10 }
  0x78   :  { %375 = vperm.xlu1 %1125, %v41_v40  }
  0x7c   :  { %1126 = vset.pattern.permute.xlu1 %v1182_v22 }
  0x7d   :  { %511 = vperm.xlu1 %1126, %v41_v40  }
  0x81   :  { %1127 = vset.pattern.permute.xlu1 %v1180_v0 }
  0x82   :  { %97 = vperm.xlu1 %1127, %v43_v55  }
  0x86   :  { %1128 = vset.pattern.permute.xlu1 %v1183_v25 }
  0x87   :  { %247 = vperm.xlu1 %1128, %v43_v55  }
  0x8b   :  { %1129 = vset.pattern.permute.xlu1 %v1182_v22 }
  0x8c   :  { %515 = vperm.xlu1 %1129, %v1284_v60  }
  0x90   :  { %1130 = vset.pattern.permute.xlu1 %v1181_v10 }
  0x91   :  { %383 = vperm.xlu1 %1130, %v43_v55  }
  0x93   :  { %v58_v34 = vpop.permute.xlu1 %57  ;;  %v53_v53 = vpop.permute.xlu0 %52 }
  0x94   :  { %v138_v15 = vmul.f32 %v1398_v9, %v53_v53  ;;  %v139_v16 = vmul.f32 %v1401_v11, %v53_v53  ;;  %v141_v19 = vmul.f32 %v1401_v11, %v58_v34  ;;  %v140_v35 = vmul.f32 %v1398_v9, %v58_v34 }
  0x95   :  { %1131 = vset.pattern.permute.xlu1 %v1183_v25 }
  0x96   :  { %251 = vperm.xlu1 %1131, %v1317_v47   ;;  %v178_v29 = vadd.f32 %v1418_v20, %v138_v15  ;;  %v179_v30 = vadd.f32 %v1421_v21, %v139_v16  ;;  %v181_v36 = vadd.f32 %v1421_v21, %v141_v19  ;;  %v180_v51 = vadd.f32 %v1418_v20, %v140_v35 }
  0x97   :  { %v1374_v59 = vpop.permute.xlu0 %72 }
  0x98   :  { %v348_v61 = vpop.permute.xlu1 %347 }
  0x99   :  { %v418_v39 = vmul.f32 %v1424_v23, %v348_v61  ;;  %v419_v40 = vmul.f32 %v1427_v24, %v348_v61 }
  0x9a   :  { %1132 = vset.pattern.permute.xlu1 %v1180_v0 }
  0x9b   :  { %107 = vperm.xlu1 %1132, %v1292_v5  }
  0x9c   :  { %v484_v60 = vpop.permute.xlu0 %483 }
  0x9d   :  { %v216_v63 = vpop.permute.xlu1 %215  ;;  %v554_v41 = vmul.f32 %v1430_v27, %v484_v60  ;;  %v555_v44 = vmul.f32 %v1438_v32, %v484_v60 }
  0x9e   :  { %v285_v33 = vmul.f32 %v1413_v18, %v216_v63  ;;  %v284_v43 = vmul.f32 %v1435_v31, %v216_v63 }
  0x9f   :  { %1133 = vset.pattern.permute.xlu1 %v1181_v10 }
  0xa0   :  { %387 = vperm.xlu1 %1133, %v1317_v47   ;;  %v1393_v6 = vpop.permute.xlu0 %495  ;;  %v317_v48 = vadd.f32 %v285_v33, %v181_v36  ;;  %v316_v58 = vadd.f32 %v284_v43, %v180_v51 }
  0xa2   :  { %v1403_v12 = vpop.permute.xlu1 %62 }
  0xa3   :  { %v142_v33 = vmul.f32 %v1398_v9, %v1403_v12 }
  0xa4   :  { %1135 = vset.pattern.permute.xlu1 %v1182_v22  ;;  %v1410_v17 = vpop.permute.xlu0 %507 }
  0xa5   :  { %523 = vperm.xlu1 %1135, %v1317_v47  }
  0xa7   :  { %v352_v28 = vpop.permute.xlu1 %351 }
  0xa8   :  { %v421_v42 = vmul.f32 %v1427_v24, %v352_v28  ;;  %v420_v54 = vmul.f32 %v1424_v23, %v352_v28 }
  0xa9   :  { %1136 = vset.pattern.permute.xlu1 %v1180_v0  ;;  %v212_v26 = vpop.permute.xlu0 %211 }
  0xaa   :  { %v282_v37 = vmul.f32 %v1435_v31, %v212_v26  ;;  %v283_v38 = vmul.f32 %v1413_v18, %v212_v26  ;;  %112 = vperm.xlu1 %1136, %v1339_v3   ;;  %v453_v53 = vadd.f32 %v421_v42, %v317_v48  ;;  %v452_v13 = vadd.f32 %v420_v54, %v316_v58 }
  0xab   :  { %v143_v26 = vmul.f32 %v1401_v11, %v1403_v12  ;;  %v182_v12 = vadd.f32 %v1418_v20, %v142_v33  ;;  %v561_v42 = vmul.f32 %v1438_v32, %v1393_v6 }
  0xac   :  { %v314_v45 = vadd.f32 %v282_v37, %v178_v29  ;;  %v315_v46 = vadd.f32 %v283_v38, %v179_v30  ;;  %v488_v47 = vpop.permute.xlu1 %487 }
  0xad   :  { %v557_v49 = vmul.f32 %v1438_v32, %v488_v47  ;;  %v220_v50 = vpop.permute.xlu0 %219  ;;  %v556_v61 = vmul.f32 %v1430_v27, %v488_v47 }
  0xae   :  { %v450_v55 = vadd.f32 %v418_v39, %v314_v45  ;;  %1138 = vset.pattern.permute.xlu1 %v1183_v25  ;;  %v451_v34 = vadd.f32 %v419_v40, %v315_v46  ;;  %v286_v37 = vmul.f32 %v1435_v31, %v220_v50  ;;  %v287_v38 = vmul.f32 %v1413_v18, %v220_v50 }
  0xaf   :  { %259 = vperm.xlu1 %1138, %v1339_v3   ;;  %v589_v1 = vadd.f32 %v557_v49, %v453_v53  ;;  %v588_v16 = vadd.f32 %v556_v61, %v452_v13 }
  0xb0   :  { %v587_v60 = vadd.f32 %v555_v44, %v451_v34  ;;  %v586_v63 = vadd.f32 %v554_v41, %v450_v55  ;;  %v318_v46 = vadd.f32 %v286_v37, %v182_v12 }
  0xb1   :  { %v68_v7 = vpop.permute.xlu1 %67  ;;  %v1459_v8 = vpop.permute.xlu0 %231  ;;  %v621_v28 = vmax.f32 %v589_v1, 0.0  ;;  %v620_v30 = vmax.f32 %v588_v16, 0.0 }
  0xb2   :  { %v619_v14 = vmax.f32 %v587_v60, 0.0  ;;  %v618_v15 = vmax.f32 %v586_v63, 0.0  ;;  %v145_v36 = vmul.f32 %v1401_v11, %v68_v7  ;;  %v560_v63 = vmul.f32 %v1430_v27, %v1393_v6 }
  0xb3   :  { %1139 = vset.pattern.permute.xlu1 %v1182_v22 }
  0xb4   :  { %527 = vperm.xlu1 %1139, %v1292_v5   ;;  %786 = vmatprep.mubr.f32.mxu0 %v619_v14  ;;  %v144_v5 = vmul.f32 %v1398_v9, %v68_v7  ;;  %v185_v44 = vadd.f32 %v1421_v21, %v145_v36  ;;  %v147_v36 = vmul.f32 %v1401_v11, %v1374_v59 }
  0xb5   :  { %v1463_v19 = vpop.permute.xlu0 %243  ;;  %787 = vmatmul.mubr.f32.vlgmr.msra.gmra.mrb[0].mxu0 %v618_v15 }
  0xb6   :  { %v224_v29 = vpop.permute.xlu1 %223  ;;  %792 = vmatprep.mubr.f32.mxu0 %v621_v28  ;;  %v184_v43 = vadd.f32 %v1418_v20, %v144_v5  ;;  %v146_v5 = vmul.f32 %v1398_v9, %v1374_v59  ;;  %v187_v37 = vadd.f32 %v1421_v21, %v147_v36 }
  0xb7   :  { %v288_v40 = vmul.f32 %v1435_v31, %v224_v29  ;;  %v289_v41 = vmul.f32 %v1413_v18, %v224_v29 }
  0xb8   :  { %1141 = vset.pattern.permute.xlu1 %v1181_v10 }
  0xb9   :  { %395 = vperm.xlu1 %1141, %v1339_v3   ;;  %v1471_v35 = vpop.permute.xlu0 %255  ;;  %793 = vmatmul.mubr.f32.gmra.mrb[2].mxu0 %v620_v30  ;;  %v183_v3 = vadd.f32 %v1421_v21, %v143_v26  ;;  %v320_v50 = vadd.f32 %v288_v40, %v184_v43  ;;  %v321_v51 = vadd.f32 %v289_v41, %v185_v44 }
  0xbb   :  { %v492_v39 = vpop.permute.xlu1 %491  ;;  %v319_v47 = vadd.f32 %v287_v38, %v183_v3 }
  0xbc   :  { %v558_v54 = vmul.f32 %v1430_v27, %v492_v39  ;;  %v559_v55 = vmul.f32 %v1438_v32, %v492_v39 }
  0xbd   :  { %1142 = vset.pattern.permute.xlu1 %v1183_v25 }
  0xbe   :  { %263 = vperm.xlu1 %1142, %v1325_v52   ;;  %v356_v45 = vpop.permute.xlu0 %355 }
  0xbf   :  { %v422_v48 = vmul.f32 %v1424_v23, %v356_v45  ;;  %v423_v49 = vmul.f32 %v1427_v24, %v356_v45 }
  0xc0   :  { %v360_v34 = vpop.permute.xlu1 %359 }
  0xc1   :  { %v454_v53 = vadd.f32 %v422_v48, %v318_v46  ;;  %v455_v58 = vadd.f32 %v423_v49, %v319_v47  ;;  %v424_v61 = vmul.f32 %v1424_v23, %v360_v34  ;;  %v425_v60 = vmul.f32 %v1427_v24, %v360_v34 }
  0xc2   :  { %1143 = vset.pattern.permute.xlu1 %v1180_v0 }
  0xc3   :  { %v456_v1 = vadd.f32 %v424_v61, %v320_v50  ;;  %v457_v7 = vadd.f32 %v425_v60, %v321_v51  ;;  %122 = vperm.xlu1 %1143, %v1346_v56   ;;  %v591_v13 = vadd.f32 %v559_v55, %v455_v58  ;;  %v590_v14 = vadd.f32 %v558_v54, %v454_v53  ;;  %v368_v53 = vpop.permute.xlu0 %367 }
  0xc4   :  { %v292_v54 = vmul.f32 %v1435_v31, %v1459_v8 }
  0xc5   :  { %v228_v15 = vpop.permute.xlu1 %227  ;;  %v623_v16 = vmax.f32 %v591_v13, 0.0  ;;  %v622_v28 = vmax.f32 %v590_v14, 0.0  ;;  %v593_v29 = vadd.f32 %v561_v42, %v457_v7  ;;  %v592_v30 = vadd.f32 %v560_v63, %v456_v1 }
  0xc6   :  { %v290_v38 = vmul.f32 %v1435_v31, %v228_v15  ;;  %v291_v39 = vmul.f32 %v1413_v18, %v228_v15  ;;  %v428_v63 = vmul.f32 %v1424_v23, %v368_v53  ;;  %v429_v1 = vmul.f32 %v1427_v24, %v368_v53 }
  0xc7   :  { %1144 = vset.pattern.permute.xlu1 %v1181_v10  ;;  %798 = vmatprep.mubr.f32.mxu0 %v623_v16  ;;  %v625_v33 = vmax.f32 %v593_v29, 0.0  ;;  %v624_v26 = vmax.f32 %v592_v30, 0.0  ;;  %v186_v10 = vadd.f32 %v1418_v20, %v146_v5  ;;  %v1534_v16 = vpop.permute.xlu0 %379  ;;  %v567_v5 = vmul.f32 %v1438_v32, %v1410_v17 }
  0xc8   :  { %399 = vperm.xlu1 %1144, %v1325_v52   ;;  %799 = vmatmul.mubr.f32.gmra.mrb[4].mxu0 %v622_v28  ;;  %v323_v3 = vadd.f32 %v291_v39, %v187_v37 }
  0xc9   :  { %804 = vmatprep.mubr.f32.mxu0 %v625_v33  ;;  %v322_v59 = vadd.f32 %v290_v38, %v186_v10 }
  0xca   :  { %v78_v6 = vpop.permute.xlu1 %77 }
  0xcb   :  { %v148_v48 = vmul.f32 %v1398_v9, %v78_v6 }
  0xcc   :  { %1146 = vset.pattern.permute.xlu1 %v1182_v22  ;;  %805 = vmatmul.mubr.f32.gmra.mrb[6].mxu0 %v624_v26  ;;  %v566_v26 = vmul.f32 %v1430_v27, %v1410_v17 }
  0xcd   :  { %535 = vperm.xlu1 %1146, %v1325_v52   ;;  %v188_v55 = vadd.f32 %v1418_v20, %v148_v48 }
  0xcf   :  { %v364_v40 = vpop.permute.xlu1 %363  ;;  %v324_v61 = vadd.f32 %v292_v54, %v188_v55 }
  0xd0   :  { %v426_v41 = vmul.f32 %v1424_v23, %v364_v40  ;;  %v427_v12 = vmul.f32 %v1427_v24, %v364_v40 }
  0xd1   :  { %1147 = vset.pattern.permute.xlu1 %v1180_v0  ;;  %v149_v0 = vmul.f32 %v1401_v11, %v78_v6  ;;  %v460_v13 = vadd.f32 %v428_v63, %v324_v61 }
  0xd2   :  { %127 = vperm.xlu1 %1147, %v1359_v57   ;;  %v458_v42 = vadd.f32 %v426_v41, %v322_v59  ;;  %v459_v43 = vadd.f32 %v427_v12, %v323_v3  ;;  %v1546_v12 = vpop.permute.xlu0 %391 }
  0xd3   :  { %v189_v34 = vadd.f32 %v1421_v21, %v149_v0 }
  0xd4   :  { %v500_v52 = vpop.permute.xlu1 %499 }
  0xd5   :  { %v562_v44 = vmul.f32 %v1430_v27, %v500_v52  ;;  %v563_v45 = vmul.f32 %v1438_v32, %v500_v52 }
  0xd6   :  { %1149 = vset.pattern.permute.xlu1 %v1183_v25  ;;  %v293_v25 = vmul.f32 %v1413_v18, %v1459_v8 }
  0xd7   :  { %v594_v46 = vadd.f32 %v562_v44, %v458_v42  ;;  %v595_v47 = vadd.f32 %v563_v45, %v459_v43  ;;  %271 = vperm.xlu1 %1149, %v1359_v57   ;;  %v88_v45 = vpop.permute.xlu0 %87 }
  0xd8   :  { %v325_v60 = vadd.f32 %v293_v25, %v189_v34  ;;  %v153_v48 = vmul.f32 %v1401_v11, %v88_v45 }
  0xd9   :  { %v83_v49 = vpop.permute.xlu1 %82  ;;  %v627_v50 = vmax.f32 %v595_v47, 0.0  ;;  %v626_v51 = vmax.f32 %v594_v46, 0.0  ;;  %v152_v47 = vmul.f32 %v1398_v9, %v88_v45 }
  0xda   :  { %v151_v8 = vmul.f32 %v1401_v11, %v83_v49  ;;  %v461_v14 = vadd.f32 %v429_v1, %v325_v60 }
  0xdb   :  { %1150 = vset.pattern.permute.xlu1 %v1182_v22  ;;  %810 = vmatprep.mubr.f32.mxu0 %v627_v50  ;;  %v150_v22 = vmul.f32 %v1398_v9, %v83_v49  ;;  %v192_v0 = vadd.f32 %v1418_v20, %v152_v47  ;;  %v193_v49 = vadd.f32 %v1421_v21, %v153_v48 }
  0xdc   :  { %539 = vperm.xlu1 %1150, %v1346_v56   ;;  %811 = vmatmul.mubr.f32.gmra.mrb[8].mxu0 %v626_v51  ;;  %v191_v6 = vadd.f32 %v1421_v21, %v151_v8 }
  0xde   :  { %v236_v58 = vpop.permute.xlu1 %235 }
  0xdf   :  { %v294_v28 = vmul.f32 %v1435_v31, %v236_v58  ;;  %v295_v29 = vmul.f32 %v1413_v18, %v236_v58 }
  0xe0   :  { %543 = vperm.xlu1 %1150, %v1359_v57   ;;  %v190_v57 = vadd.f32 %v1418_v20, %v150_v22 }
  0xe1   :  { %v327_v39 = vadd.f32 %v295_v29, %v191_v6  ;;  %v298_v29 = vmul.f32 %v1435_v31, %v1463_v19 }
  0xe2   :  { %v326_v38 = vadd.f32 %v294_v28, %v190_v57  ;;  %v103_v28 = vpop.permute.xlu0 %102 }
  0xe3   :  { %v504_v7 = vpop.permute.xlu1 %503 }
  0xe4   :  { %v564_v56 = vmul.f32 %v1430_v27, %v504_v7  ;;  %v565_v15 = vmul.f32 %v1438_v32, %v504_v7 }
  0xe6   :  { %v596_v30 = vadd.f32 %v564_v56, %v460_v13  ;;  %v597_v33 = vadd.f32 %v565_v15, %v461_v14 }
  0xe8   :  { %v372_v36 = vpop.permute.xlu1 %371  ;;  %v629_v10 = vmax.f32 %v597_v33, 0.0  ;;  %v628_v37 = vmax.f32 %v596_v30, 0.0  ;;  %v299_v30 = vmul.f32 %v1413_v18, %v1463_v19 }
  0xe9   :  { %v430_v40 = vmul.f32 %v1424_v23, %v372_v36  ;;  %v431_v41 = vmul.f32 %v1427_v24, %v372_v36  ;;  %v435_v36 = vmul.f32 %v1427_v24, %v1534_v16 }
  0xea   :  { %816 = vmatprep.mubr.f32.mxu0 %v629_v10 }
  0xeb   :  { %v462_v59 = vadd.f32 %v430_v40, %v326_v38  ;;  %v463_v3 = vadd.f32 %v431_v41, %v327_v39  ;;  %817 = vmatmul.mubr.f32.gmra.mrb[10].mxu0 %v628_v37 }
  0xed   :  { %v240_v52 = vpop.permute.xlu1 %239  ;;  %v599_v42 = vadd.f32 %v567_v5, %v463_v3  ;;  %v598_v43 = vadd.f32 %v566_v26, %v462_v59  ;;  %v1566_v26 = vpop.permute.xlu0 %117  ;;  %v434_v5 = vmul.f32 %v1424_v23, %v1534_v16 }
  0xee   :  { %v296_v50 = vmul.f32 %v1435_v31, %v240_v52  ;;  %v297_v51 = vmul.f32 %v1413_v18, %v240_v52 }
  0xef   :  { %v631_v44 = vmax.f32 %v599_v42, 0.0  ;;  %v630_v17 = vmax.f32 %v598_v43, 0.0 }
  0xf0   :  { %v328_v34 = vadd.f32 %v296_v50, %v192_v0  ;;  %v329_v53 = vadd.f32 %v297_v51, %v193_v49 }
  0xf1   :  { %822 = vmatprep.mubr.f32.mxu0 %v631_v44  ;;  %v520_v43 = vpop.permute.xlu0 %519 }
  0xf2   :  { %v93_v46 = vpop.permute.xlu1 %92  ;;  %823 = vmatmul.mubr.f32.gmra.mrb[12].mxu0 %v630_v17  ;;  %v572_v47 = vmul.f32 %v1430_v27, %v520_v43  ;;  %v573_v48 = vmul.f32 %v1438_v32, %v520_v43 }
  0xf3   :  { %v154_v7 = vmul.f32 %v1398_v9, %v93_v46  ;;  %v155_v13 = vmul.f32 %v1401_v11, %v93_v46 }
  0xf5   :  { %v194_v33 = vadd.f32 %v1418_v20, %v154_v7  ;;  %v195_v57 = vadd.f32 %v1421_v21, %v155_v13  ;;  %v304_v13 = vmul.f32 %v1435_v31, %v1471_v35 }
  0xf7   :  { %v376_v54 = vpop.permute.xlu1 %375  ;;  %v330_v10 = vadd.f32 %v298_v29, %v194_v33  ;;  %v331_v37 = vadd.f32 %v299_v30, %v195_v57 }
  0xf8   :  { %v432_v25 = vmul.f32 %v1424_v23, %v376_v54  ;;  %v433_v55 = vmul.f32 %v1427_v24, %v376_v54 }
  0xf9   :  { %v466_v40 = vadd.f32 %v434_v5, %v330_v10  ;;  %v467_v41 = vadd.f32 %v435_v36, %v331_v37 }
  0xfa   :  { %v464_v61 = vadd.f32 %v432_v25, %v328_v34  ;;  %v465_v60 = vadd.f32 %v433_v55, %v329_v53 }
  0xfc   :  { %v512_v58 = vpop.permute.xlu1 %511 }
  0xfd   :  { %v568_v63 = vmul.f32 %v1430_v27, %v512_v58  ;;  %v569_v1 = vmul.f32 %v1438_v32, %v512_v58 }
  0xff   :  { %v600_v22 = vadd.f32 %v568_v63, %v464_v61  ;;  %v601_v8 = vadd.f32 %v569_v1, %v465_v60  ;;  %v158_v1 = vmul.f32 %v1398_v9, %v103_v28 }
 0x101   :  { %v98_v14 = vpop.permute.xlu1 %97  ;;  %v633_v56 = vmax.f32 %v601_v8, 0.0  ;;  %v632_v15 = vmax.f32 %v600_v22, 0.0  ;;  %v159_v8 = vmul.f32 %v1401_v11, %v103_v28 }
 0x102   :  { %v156_v38 = vmul.f32 %v1398_v9, %v98_v14  ;;  %v157_v19 = vmul.f32 %v1401_v11, %v98_v14  ;;  %v440_v14 = vmul.f32 %v1424_v23, %v1546_v12 }
 0x103   :  { %828 = vmatprep.mubr.f32.mxu0 %v633_v56  ;;  %v199_v29 = vadd.f32 %v1421_v21, %v159_v8 }
 0x104   :  { %829 = vmatmul.mubr.f32.gmra.mrb[14].mxu0 %v632_v15  ;;  %v196_v17 = vadd.f32 %v1418_v20, %v156_v38  ;;  %v197_v45 = vadd.f32 %v1421_v21, %v157_v19  ;;  %v198_v15 = vadd.f32 %v1418_v20, %v158_v1 }
 0x106   :  { %v248_v6 = vpop.permute.xlu1 %247 }
 0x107   :  { %v300_v52 = vmul.f32 %v1435_v31, %v248_v6  ;;  %v301_v42 = vmul.f32 %v1413_v18, %v248_v6 }
 0x109   :  { %v332_v50 = vadd.f32 %v300_v52, %v196_v17  ;;  %v333_v51 = vadd.f32 %v301_v42, %v197_v45  ;;  %v305_v17 = vmul.f32 %v1413_v18, %v1471_v35  ;;  %v532_v35 = vpop.permute.xlu0 %531 }
 0x10b   :  { %v516_v39 = vpop.permute.xlu1 %515 }
 0x10c   :  { %v570_v59 = vmul.f32 %v1430_v27, %v516_v39  ;;  %v571_v3 = vmul.f32 %v1438_v32, %v516_v39 }
 0x10e   :  { %v602_v44 = vadd.f32 %v570_v59, %v466_v40  ;;  %v603_v16 = vadd.f32 %v571_v3, %v467_v41 }
 0x110   :  { %v384_v46 = vpop.permute.xlu1 %383  ;;  %v635_v0 = vmax.f32 %v603_v16, 0.0  ;;  %v634_v49 = vmax.f32 %v602_v44, 0.0 }
 0x111   :  { %v436_v54 = vmul.f32 %v1424_v23, %v384_v46  ;;  %v437_v25 = vmul.f32 %v1427_v24, %v384_v46  ;;  %v441_v46 = vmul.f32 %v1427_v24, %v1546_v12 }
 0x112   :  { %834 = vmatprep.mubr.f32.mxu0 %v635_v0 }
 0x113   :  { %v468_v55 = vadd.f32 %v436_v54, %v332_v50  ;;  %v469_v34 = vadd.f32 %v437_v25, %v333_v51  ;;  %835 = vmatmul.mubr.f32.gmra.mrb[16].mxu0 %v634_v49 }
 0x115   :  { %v604_v53 = vadd.f32 %v572_v47, %v468_v55  ;;  %v605_v58 = vadd.f32 %v573_v48, %v469_v34  ;;  %v252_v61 = vpop.permute.xlu1 %251 }
 0x116   :  { %v302_v30 = vmul.f32 %v1435_v31, %v252_v61  ;;  %v303_v33 = vmul.f32 %v1413_v18, %v252_v61 }
 0x117   :  { %v637_v60 = vmax.f32 %v605_v58, 0.0  ;;  %v636_v63 = vmax.f32 %v604_v53, 0.0 }
 0x118   :  { %v334_v10 = vadd.f32 %v302_v30, %v198_v15  ;;  %v335_v37 = vadd.f32 %v303_v33, %v199_v29 }
 0x119   :  { %840 = vmatprep.mubr.f32.mxu0 %v637_v60  ;;  %v578_v60 = vmul.f32 %v1430_v27, %v532_v35 }
 0x11a   :  { %v108_v22 = vpop.permute.xlu1 %107  ;;  %841 = vmatmul.mubr.f32.gmra.mrb[18].mxu0 %v636_v63  ;;  %v579_v63 = vmul.f32 %v1438_v32, %v532_v35 }
 0x11b   :  { %v160_v7 = vmul.f32 %v1398_v9, %v108_v22  ;;  %v161_v52 = vmul.f32 %v1401_v11, %v108_v22 }
 0x11d   :  { %v200_v56 = vadd.f32 %v1418_v20, %v160_v7  ;;  %v201_v16 = vadd.f32 %v1421_v21, %v161_v52 }
 0x11f   :  { %v336_v57 = vadd.f32 %v304_v13, %v200_v56  ;;  %v388_v28 = vpop.permute.xlu1 %387  ;;  %v337_v47 = vadd.f32 %v305_v17, %v201_v16  ;;  %v268_v16 = vpop.permute.xlu0 %267 }
 0x120   :  { %v438_v6 = vmul.f32 %v1424_v23, %v388_v28  ;;  %v439_v5 = vmul.f32 %v1427_v24, %v388_v28 }
 0x121   :  { %v472_v36 = vadd.f32 %v440_v14, %v336_v57  ;;  %v473_v50 = vadd.f32 %v441_v46, %v337_v47 }
 0x122   :  { %v470_v19 = vadd.f32 %v438_v6, %v334_v10  ;;  %v471_v39 = vadd.f32 %v439_v5, %v335_v37  ;;  %v164_v5 = vmul.f32 %v1398_v9, %v1566_v26 }
 0x124   :  { %v524_v38 = vpop.permute.xlu1 %523 }
 0x125   :  { %v574_v40 = vmul.f32 %v1430_v27, %v524_v38  ;;  %v575_v41 = vmul.f32 %v1438_v32, %v524_v38 }
 0x127   :  { %v606_v59 = vadd.f32 %v574_v40, %v470_v19  ;;  %v607_v3 = vadd.f32 %v575_v41, %v471_v39  ;;  %v204_v19 = vadd.f32 %v1418_v20, %v164_v5 }
 0x129   :  { %v113_v42 = vpop.permute.xlu1 %112  ;;  %v639_v43 = vmax.f32 %v607_v3, 0.0  ;;  %v638_v44 = vmax.f32 %v606_v59, 0.0 }
 0x12a   :  { %v162_v48 = vmul.f32 %v1398_v9, %v113_v42  ;;  %v163_v0 = vmul.f32 %v1401_v11, %v113_v42 }
 0x12b   :  { %846 = vmatprep.mubr.f32.mxu0 %v639_v43 }
 0x12c   :  { %847 = vmatmul.mubr.f32.gmra.mrb[20].mxu0 %v638_v44  ;;  %v202_v12 = vadd.f32 %v1418_v20, %v162_v48  ;;  %v203_v58 = vadd.f32 %v1421_v21, %v163_v0 }
 0x12e   :  { %v260_v45 = vpop.permute.xlu1 %259 }
 0x12f   :  { %v306_v25 = vmul.f32 %v1435_v31, %v260_v45  ;;  %v307_v55 = vmul.f32 %v1413_v18, %v260_v45 }
 0x131   :  { %v338_v8 = vadd.f32 %v306_v25, %v202_v12  ;;  %v339_v7 = vadd.f32 %v307_v55, %v203_v58  ;;  %v311_v25 = vmul.f32 %v1413_v18, %v268_v16  ;;  %v404_v55 = vpop.permute.xlu0 %403 }
 0x133   :  { %v528_v49 = vpop.permute.xlu1 %527 }
 0x134   :  { %v576_v51 = vmul.f32 %v1430_v27, %v528_v49  ;;  %v577_v54 = vmul.f32 %v1438_v32, %v528_v49 }
 0x136   :  { %v608_v34 = vadd.f32 %v576_v51, %v472_v36  ;;  %v609_v53 = vadd.f32 %v577_v54, %v473_v50  ;;  %v165_v36 = vmul.f32 %v1401_v11, %v1566_v26  ;;  %v310_v54 = vmul.f32 %v1435_v31, %v268_v16 }
 0x138   :  { %v396_v61 = vpop.permute.xlu1 %395  ;;  %v641_v1 = vmax.f32 %v609_v53, 0.0  ;;  %v640_v22 = vmax.f32 %v608_v34, 0.0  ;;  %v205_v39 = vadd.f32 %v1421_v21, %v165_v36 }
 0x139   :  { %v442_v13 = vmul.f32 %v1424_v23, %v396_v61  ;;  %v443_v14 = vmul.f32 %v1427_v24, %v396_v61 }
 0x13a   :  { %852 = vmatprep.mubr.f32.mxu0 %v641_v1  ;;  %v447_v1 = vmul.f32 %v1427_v24, %v404_v55 }
 0x13b   :  { %v474_v56 = vadd.f32 %v442_v13, %v338_v8  ;;  %v475_v15 = vadd.f32 %v443_v14, %v339_v7  ;;  %853 = vmatmul.mubr.f32.gmra.mrb[22].mxu0 %v640_v22  ;;  %v408_v22 = vpop.permute.xlu0 %407 }
 0x13c   :  { %v449_v14 = vmul.f32 %v1427_v24, %v408_v22 }
 0x13d   :  { %v610_v29 = vadd.f32 %v578_v60, %v474_v56  ;;  %v611_v30 = vadd.f32 %v579_v63, %v475_v15  ;;  %v264_v33 = vpop.permute.xlu1 %263  ;;  %v446_v63 = vmul.f32 %v1424_v23, %v404_v55 }
 0x13e   :  { %v308_v10 = vmul.f32 %v1435_v31, %v264_v33  ;;  %v309_v37 = vmul.f32 %v1413_v18, %v264_v33 }
 0x13f   :  { %v643_v57 = vmax.f32 %v611_v30, 0.0  ;;  %v642_v28 = vmax.f32 %v610_v29, 0.0 }
 0x140   :  { %v340_v59 = vadd.f32 %v308_v10, %v204_v19  ;;  %v341_v3 = vadd.f32 %v309_v37, %v205_v39 }
 0x141   :  { %858 = vmatprep.mubr.f32.mxu0 %v643_v57 }
 0x142   :  { %v123_v6 = vpop.permute.xlu1 %122  ;;  %859 = vmatmul.mubr.f32.gmra.mrb[24].mxu0 %v642_v28 }
 0x143   :  { %v166_v46 = vmul.f32 %v1398_v9, %v123_v6  ;;  %v167_v47 = vmul.f32 %v1401_v11, %v123_v6 }
 0x145   :  { %v206_v50 = vadd.f32 %v1418_v20, %v166_v46  ;;  %v207_v51 = vadd.f32 %v1421_v21, %v167_v47 }
 0x147   :  { %v400_v38 = vpop.permute.xlu1 %399  ;;  %v342_v61 = vadd.f32 %v310_v54, %v206_v50  ;;  %v343_v60 = vadd.f32 %v311_v25, %v207_v51 }
 0x148   :  { %v444_v40 = vmul.f32 %v1424_v23, %v400_v38  ;;  %v445_v41 = vmul.f32 %v1427_v24, %v400_v38  ;;  %v716_v38 = vsub.s32 5, %v1376_v62 }
 0x149   :  { %v478_v56 = vadd.f32 %v446_v63, %v342_v61 }
 0x14a   :  { %v476_v42 = vadd.f32 %v444_v40, %v340_v59  ;;  %v477_v43 = vadd.f32 %v445_v41, %v341_v3  ;;  %v1652_v19 = vrot.slane %v1384_v2, %v716_v38 }
 0x14c   :  { %v536_v52 = vpop.permute.xlu1 %535 }
 0x14d   :  { %v580_v26 = vmul.f32 %v1430_v27, %v536_v52  ;;  %v581_v44 = vmul.f32 %v1438_v32, %v536_v52 }
 0x14f   :  { %v612_v17 = vadd.f32 %v580_v26, %v476_v42  ;;  %v613_v45 = vadd.f32 %v581_v44, %v477_v43 }
 0x151   :  { %v128_v48 = vpop.permute.xlu1 %127  ;;  %v645_v0 = vmax.f32 %v613_v45, 0.0  ;;  %v644_v49 = vmax.f32 %v612_v17, 0.0 }
 0x152   :  { %v168_v35 = vmul.f32 %v1398_v9, %v128_v48  ;;  %v169_v34 = vmul.f32 %v1401_v11, %v128_v48  ;;  %v448_v11 = vmul.f32 %v1424_v23, %v408_v22 }
 0x153   :  { %864 = vmatprep.mubr.f32.mxu0 %v645_v0 }
 0x154   :  { %865 = vmatmul.mubr.f32.gmra.mrb[26].mxu0 %v644_v49  ;;  %v208_v8 = vadd.f32 %v1418_v20, %v168_v35  ;;  %v209_v7 = vadd.f32 %v1421_v21, %v169_v34 }
 0x156   :  { %v272_v53 = vpop.permute.xlu1 %271 }
 0x157   :  { %v312_v12 = vmul.f32 %v1435_v31, %v272_v53  ;;  %v313_v58 = vmul.f32 %v1413_v18, %v272_v53  ;;  %v479_v18 = vadd.f32 %v447_v1, %v343_v60 }
 0x159   :  { %v344_v13 = vadd.f32 %v312_v12, %v208_v8  ;;  %v345_v9 = vadd.f32 %v313_v58, %v209_v7 }
 0x15b   :  { %v540_v31 = vpop.permute.xlu1 %539  ;;  %v480_v57 = vadd.f32 %v448_v11, %v344_v13  ;;  %v481_v28 = vadd.f32 %v449_v14, %v345_v9  ;;  %v920_v14 = vrot.slane %v1389_v4, 6 }
 0x15c   :  { %v582_v15 = vmul.f32 %v1430_v27, %v540_v31  ;;  %v583_v29 = vmul.f32 %v1438_v32, %v540_v31 }
 0x15d   :  { %987 = vmatprep.mubr.f32.mxu1 %v920_v14 }
 0x15e   :  { %v614_v30 = vadd.f32 %v582_v15, %v478_v56  ;;  %v615_v33 = vadd.f32 %v583_v29, %v479_v18 }
 0x15f   :  { %v544_v20 = vpop.permute.xlu1 %543 }
 0x160   :  { %v584_v21 = vmul.f32 %v1430_v27, %v544_v20  ;;  %v585_v6 = vmul.f32 %v1438_v32, %v544_v20  ;;  %v647_v5 = vmax.f32 %v615_v33, 0.0  ;;  %v646_v23 = vmax.f32 %v614_v30, 0.0 }
 0x161   :  { %v1655_v27 = vrot.slane %v1389_v4, %v716_v38 }
 0x162   :  { %v616_v36 = vadd.f32 %v584_v21, %v480_v57  ;;  %v617_v24 = vadd.f32 %v585_v6, %v481_v28  ;;  %870 = vmatprep.mubr.f32.mxu0 %v647_v5 }
 0x163   :  { %871 = vmatmul.mubr.f32.gmra.mrb[28].mxu0 %v646_v23 }
 0x164   :  { %v648_v10 = vmax.f32 %v616_v36, 0.0  ;;  %v649_v37 = vmax.f32 %v617_v24, 0.0 }
 0x166   :  { %876 = vmatprep.mubr.f32.mxu0 %v649_v37 }
 0x167   :  { %877 = vmatmul.mubr.f32.gmra.mrb[30].mxu0 %v648_v10 }
 0x188   :  { %v788_v39 = vpop.f32.mrb[0].mxu0 }
 0x189   :  { %v790_v32 = vpop.f32.mrb[1].mxu0  ;;  %v789_v40 = vadd.f32 %v788_v39, %v1652_v19 }
 0x18a   :  { %v791_v41 = vadd.f32 %v790_v32, %v1655_v27 }
 0x18b   :  { %v883_v43 = vmax.f32 %v789_v40, 0.0 }
 0x18c   :  { %v794_v59 = vpop.f32.mrb[2].mxu0  ;;  %v884_v26 = vmax.f32 %v791_v41, 0.0 }
 0x18d   :  { %v795_v3 = vadd.f32 %v794_v59, %v1652_v19  ;;  %v796_v52 = vpop.f32.mrb[3].mxu0 }
 0x18e   :  { %v797_v42 = vadd.f32 %v796_v52, %v1655_v27 }
 0x18f   :  { %v885_v62 = vmax.f32 %v795_v3, 0.0 }
 0x190   :  { %v886_v2 = vmax.f32 %v797_v42, 0.0 }
 0x191   :  { %v1065_v44 = vpack.c.bf16 %v885_v62, %v883_v43 }
 0x192   :  { %v1063_v16 = vpack.c.bf16 %v886_v2, %v884_v26 }
 0x194   :  { %1064 = vmatprep.subr.bf16.mxu1 %v1063_v16 }
 0x195   :  { %1066 = vmatpush1.bf16.xpose.msra.mxu1 %v1065_v44 }
 0x19b   :  { %v800_v17 = vpop.f32.mrb[4].mxu0 }
 0x19c   :  { %v802_v45 = vpop.f32.mrb[5].mxu0  ;;  %v801_v46 = vadd.f32 %v800_v17, %v1652_v19 }
 0x19d   :  { %v803_v47 = vadd.f32 %v802_v45, %v1655_v27 }
 0x19e   :  { %v887_v51 = vmax.f32 %v801_v46, 0.0 }
 0x19f   :  { %v806_v48 = vpop.f32.mrb[6].mxu0  ;;  %v888_v25 = vmax.f32 %v803_v47, 0.0 }
 0x1a0   :  { %v807_v0 = vadd.f32 %v806_v48, %v1652_v19  ;;  %v808_v49 = vpop.f32.mrb[7].mxu0 }
 0x1a1   :  { %v809_v50 = vadd.f32 %v808_v49, %v1655_v27 }
 0x1a2   :  { %v889_v54 = vmax.f32 %v807_v0, 0.0 }
 0x1a3   :  { %v890_v55 = vmax.f32 %v809_v50, 0.0 }
 0x1a4   :  { %v1069_v35 = vpack.c.bf16 %v889_v54, %v887_v51 }
 0x1a5   :  { %v1067_v34 = vpack.c.bf16 %v890_v55, %v888_v25 }
 0x1a7   :  { %1068 = vmatprep.subr.bf16.mxu1 %v1067_v34 }
 0x1a8   :  { %1070 = vmatpush1.bf16.xpose.msra.mxu1 %v1069_v35 }
 0x1af   :  { %v812_v53 = vpop.f32.mrb[8].mxu0 }
 0x1b0   :  { %v814_v12 = vpop.f32.mrb[9].mxu0  ;;  %v813_v58 = vadd.f32 %v812_v53, %v1652_v19 }
 0x1b1   :  { %v815_v61 = vadd.f32 %v814_v12, %v1655_v27 }
 0x1b2   :  { %v891_v8 = vmax.f32 %v813_v58, 0.0 }
 0x1b3   :  { %v892_v13 = vmax.f32 %v815_v61, 0.0 }
 0x1be   :  { %v818_v60 = vpop.f32.mrb[10].mxu0 }
 0x1bf   :  { %v819_v63 = vadd.f32 %v818_v60, %v1652_v19  ;;  %v820_v1 = vpop.f32.mrb[11].mxu0 }
 0x1c0   :  { %v821_v22 = vadd.f32 %v820_v1, %v1655_v27 }
 0x1c1   :  { %v893_v7 = vmax.f32 %v819_v63, 0.0 }
 0x1c2   :  { %v894_v9 = vmax.f32 %v821_v22, 0.0 }
 0x1c3   :  { %v1073_v11 = vpack.c.bf16 %v893_v7, %v891_v8 }
 0x1c4   :  { %v1071_v31 = vpack.c.bf16 %v894_v9, %v892_v13 }
 0x1c5   :  { %v824_v56 = vpop.f32.mrb[12].mxu0 }
 0x1c6   :  { %v826_v18 = vpop.f32.mrb[13].mxu0  ;;  %1072 = vmatprep.subr.bf16.mxu1 %v1071_v31  ;;  %v825_v15 = vadd.f32 %v824_v56, %v1652_v19 }
 0x1c7   :  { %1074 = vmatpush1.bf16.xpose.msra.mxu1 %v1073_v11  ;;  %v827_v29 = vadd.f32 %v826_v18, %v1655_v27 }
 0x1c8   :  { %v895_v20 = vmax.f32 %v825_v15, 0.0 }
 0x1c9   :  { %v896_v6 = vmax.f32 %v827_v29, 0.0 }
 0x1d7   :  { %v830_v30 = vpop.f32.mrb[14].mxu0 }
 0x1d8   :  { %v831_v33 = vadd.f32 %v830_v30, %v1652_v19  ;;  %v832_v57 = vpop.f32.mrb[15].mxu0 }
 0x1d9   :  { %v833_v28 = vadd.f32 %v832_v57, %v1655_v27 }
 0x1da   :  { %v897_v21 = vmax.f32 %v831_v33, 0.0 }
 0x1db   :  { %v898_v4 = vmax.f32 %v833_v28, 0.0 }
 0x1dc   :  { %v1077_v5 = vpack.c.bf16 %v897_v21, %v895_v20  ;;  %v1152_v20 = vld [vmem:[%s1701_s2] sm:$0xff] }
 0x1dd   :  { %v1075_v23 = vpack.c.bf16 %v898_v4, %v896_v6  ;;  %v919_v21 = vrot.slane %v1152_v20, 6 }
 0x1df   :  { %1076 = vmatprep.subr.bf16.mxu1 %v1075_v23 }
 0x1e0   :  { %1078 = vmatpush1.bf16.xpose.msra.mxu1 %v1077_v5 }
 0x1e6   :  { %v836_v36 = vpop.f32.mrb[16].mxu0 }
 0x1e7   :  { %v838_v24 = vpop.f32.mrb[17].mxu0  ;;  %v837_v10 = vadd.f32 %v836_v36, %v1652_v19 }
 0x1e8   :  { %v839_v37 = vadd.f32 %v838_v24, %v1655_v27 }
 0x1e9   :  { %v899_v41 = vmax.f32 %v837_v10, 0.0 }
 0x1ea   :  { %v900_v3 = vmax.f32 %v839_v37, 0.0 }
 0x1ed   :  { %v842_v38 = vpop.f32.mrb[18].mxu0 }
 0x1ee   :  { %v843_v39 = vadd.f32 %v842_v38, %v1652_v19  ;;  %v844_v32 = vpop.f32.mrb[19].mxu0 }
 0x1ef   :  { %v845_v40 = vadd.f32 %v844_v32, %v1655_v27 }
 0x1f0   :  { %v901_v59 = vmax.f32 %v843_v39, 0.0 }
 0x1f1   :  { %v902_v52 = vmax.f32 %v845_v40, 0.0 }
 0x1f2   :  { %v1081_v42 = vpack.c.bf16 %v901_v59, %v899_v41 }
 0x1f3   :  { %v1079_v43 = vpack.c.bf16 %v902_v52, %v900_v3 }
 0x1f5   :  { %1080 = vmatprep.subr.bf16.mxu1 %v1079_v43 }
 0x1f6   :  { %1082 = vmatpush1.bf16.xpose.msra.mxu1 %v1081_v42 }
 0x1ff   :  { %v848_v62 = vpop.f32.mrb[20].mxu0 }
 0x200   :  { %v850_v26 = vpop.f32.mrb[21].mxu0  ;;  %v849_v2 = vadd.f32 %v848_v62, %v1652_v19 }
 0x201   :  { %v851_v44 = vadd.f32 %v850_v26, %v1655_v27 }
 0x202   :  { %v903_v47 = vmax.f32 %v849_v2, 0.0 }
 0x203   :  { %v904_v0 = vmax.f32 %v851_v44, 0.0 }
 0x20e   :  { %v854_v16 = vpop.f32.mrb[22].mxu0 }
 0x20f   :  { %v855_v17 = vadd.f32 %v854_v16, %v1652_v19  ;;  %v856_v45 = vpop.f32.mrb[23].mxu0 }
 0x210   :  { %v857_v46 = vadd.f32 %v856_v45, %v1655_v27 }
 0x211   :  { %v905_v48 = vmax.f32 %v855_v17, 0.0 }
 0x212   :  { %v906_v49 = vmax.f32 %v857_v46, 0.0 }
 0x213   :  { %v1085_v50 = vpack.c.bf16 %v905_v48, %v903_v47 }
 0x214   :  { %v1083_v51 = vpack.c.bf16 %v906_v49, %v904_v0 }
 0x215   :  { %v860_v54 = vpop.f32.mrb[24].mxu0 }
 0x216   :  { %v862_v25 = vpop.f32.mrb[25].mxu0  ;;  %1084 = vmatprep.subr.bf16.mxu1 %v1083_v51  ;;  %v861_v55 = vadd.f32 %v860_v54, %v1652_v19 }
 0x217   :  { %1086 = vmatpush1.bf16.xpose.msra.mxu1 %v1085_v50  ;;  %v863_v35 = vadd.f32 %v862_v25, %v1655_v27 }
 0x218   :  { %v907_v61 = vmax.f32 %v861_v55, 0.0 }
 0x219   :  { %v908_v63 = vmax.f32 %v863_v35, 0.0 }
 0x227   :  { %v866_v34 = vpop.f32.mrb[26].mxu0 }
 0x228   :  { %v867_v53 = vadd.f32 %v866_v34, %v1652_v19  ;;  %v868_v12 = vpop.f32.mrb[27].mxu0 }
 0x229   :  { %v869_v58 = vadd.f32 %v868_v12, %v1655_v27 }
 0x22a   :  { %v909_v60 = vmax.f32 %v867_v53, 0.0 }
 0x22b   :  { %v910_v1 = vmax.f32 %v869_v58, 0.0 }
 0x22c   :  { %v1089_v22 = vpack.c.bf16 %v909_v60, %v907_v61 }
 0x22d   :  { %v1087_v8 = vpack.c.bf16 %v910_v1, %v908_v63 }
 0x22f   :  { %1088 = vmatprep.subr.bf16.mxu1 %v1087_v8 }
 0x230   :  { %1090 = vmatpush1.bf16.xpose.msra.mxu1 %v1089_v22 }
 0x236   :  { %v872_v7 = vpop.f32.mrb[28].mxu0 }
 0x237   :  { %v874_v13 = vpop.f32.mrb[29].mxu0  ;;  %v873_v9 = vadd.f32 %v872_v7, %v1652_v19 }
 0x238   :  { %v875_v11 = vadd.f32 %v874_v13, %v1655_v27 }
 0x239   :  { %v911_v15 = vmax.f32 %v873_v9, 0.0 }
 0x23a   :  { %v878_v14 = vpop.f32.mrb[30].mxu0  ;;  %v912_v30 = vmax.f32 %v875_v11, 0.0 }
 0x23b   :  { %v879_v31 = vadd.f32 %v878_v14, %v1652_v19  ;;  %v880_v56 = vpop.f32.mrb[31].mxu0  ;;  %v916_v19 = vstv %s1702_s3 }
 0x23c   :  { %v881_v18 = vadd.f32 %v880_v56, %v1655_v27 }
 0x23d   :  { %v913_v29 = vmax.f32 %v879_v31, 0.0 }
 0x23e   :  { %v914_v33 = vmax.f32 %v881_v18, 0.0 }
 0x23f   :  { %v1093_v57 = vpack.c.bf16 %v913_v29, %v911_v15 }
 0x240   :  { %v1091_v28 = vpack.c.bf16 %v914_v33, %v912_v30 }
 0x242   :  { %1092 = vmatprep.subr.bf16.mxu1 %v1091_v28 }
 0x243   :  { %1094 = vmatpush1.bf16.xpose.msra.mxu1 %v1093_v57 }
 0x24a   :  { %988 = vmatmul.mubr.f32.vlgmr.msra.gmra.mrb[0].mxu1 %v919_v21 }
 0x31d   :  { %v989_v6 = vpop.f32.mrb[0].mxu1 }
 0x31e   :  { %v990_v27 = vadd.f32 %v989_v6, %v916_v19  ;;  %v991_v4 = vpop.f32.mrb[1].mxu1 }
 0x320   :  { %993 = vst [vmem:[%s1703_s4] sm:$0x1] %v990_v27 }
 0x321   :  { %998 = vsyncpa [#allocation4], 1 }

</bundles_post_ra>
